<compile_context>
chip_gen: v7x
topology: tpu7x:2x2x1
jax: 0.10.0
libtpu: 0.0.40
codegen_flags: <defaults>
</compile_context>

<pallas_src>
import jax
import jax.numpy as jnp
from jax.experimental import pallas as pl
from jax.experimental.pallas import tpu as pltpu


def _focus_kernel(x_ref, w_ref, s_ref, b_ref, o_ref):
    """(Cout, tm) = W(Cout, K) @ X(K, tm); exact f32 BN scale/bias + SiLU; bf16 store."""
    acc = jnp.dot(w_ref[...], x_ref[0], preferred_element_type=jnp.float32)  # (Cout, tm) f32
    y = acc * s_ref[...] + b_ref[...]                       # BN (eval) scale + bias, f32
    sig = pl.reciprocal(1.0 + jnp.exp(-y), approx=True)     # exp + recip on the EUP slot
    o_ref[0] = (y * sig).astype(o_ref.dtype)                # SiLU / Swish, bf16 store


def _round_up(x, m):
    return (x + m - 1) // m * m


def _pick_tile_m(m, k, cout, n, act_bytes, out_bytes, budget_bytes=12 << 20):
    """Lane tile tm (multiple of 128) from a per-step VMEM budget, plus padded M."""
    per_lane = 2 * (act_bytes * k + out_bytes * cout)   # double-buffered act + out, per lane
    cap = max(128, min(8192, (budget_bytes // per_lane) // 128 * 128))
    if n == 1 and m > 128:
        # keep >= 2 grid steps along a "parallel" axis so v7x's two TensorCores both work
        cap = min(cap, max(128, _round_up(-(-m // 2), 128)))
    mp128 = _round_up(m, 128)
    q = mp128 // 128
    best = 1
    for d in range(1, q + 1):            # trace-time only; q is small
        if q % d == 0 and 128 * d <= cap:
            best = d
    tm = 128 * best
    if tm < 1024 <= cap and m > 8192:
        # exact tiling of the 128-padded M would force tiny tiles; pad further instead
        tm = min(cap, 2048)
        return tm, _round_up(m, tm)
    return tm, mp128


def focus_forward(x, conv_w, bn_gamma, bn_beta, bn_mean, bn_var, *,
                  eps=0.001, compute_dtype=jnp.bfloat16, out_dtype=jnp.bfloat16):
    """Forward pass equivalent to Focus.forward (kernel_size=1, stride=1).

    x:       (N, Cin, H, W)        NCHW like PyTorch
    conv_w:  (Cout, 4*Cin, 1, 1)   PyTorch conv weight (bias=False, BN follows)
    bn_*:    (Cout,)               BatchNorm (eval-mode) params / running stats
    """
    N, C, H, W = x.shape
    Cout = conv_w.shape[0]
    Ho, Wo = H // 2, W // 2
    M = Ho * Wo
    K = 4 * C

    # --- space-to-depth: one fused cast + transpose in XLA -------------------
    # xm[n, (wp*2+hp)*C + c, ho*Wo + wo] = x[n, c, 2*ho+hp, 2*wo+wp]
    # -> channel groups ordered (tl, bl, tr, br), identical to the PyTorch concat.
    # TODO(synk): fuse this into the kernel once stride-2 lane loads are available.
    xr = x.astype(compute_dtype).reshape(N, C, Ho, 2, Wo, 2)
    xm = jnp.transpose(xr, (0, 5, 3, 1, 2, 4)).reshape(N, K, M)

    # --- BN (eval) as an exact f32 scale/bias epilogue; conv weight stays bf16
    inv_std = (bn_gamma / jnp.sqrt(bn_var + eps)).astype(jnp.float32)
    scale = inv_std.reshape(Cout, 1)
    bias = (bn_beta.astype(jnp.float32)
            - bn_mean.astype(jnp.float32) * inv_std).reshape(Cout, 1)
    w_mat = conv_w.reshape(Cout, K).astype(compute_dtype)

    act_bytes = jnp.dtype(compute_dtype).itemsize
    out_bytes = jnp.dtype(out_dtype).itemsize
    tm, Mp = _pick_tile_m(M, K, Cout, N, act_bytes, out_bytes)
    if Mp != M:
        xm = jnp.pad(xm, ((0, 0), (0, 0), (0, Mp - M)))

    grid = (N, Mp // tm)

    # per-step VMEM footprint: double-buffered activation/output tiles + resident params
    footprint = (2 * tm * (act_bytes * K + out_bytes * Cout)
                 + Cout * K * act_bytes + 2 * Cout * 4)
    vmem_limit = int(min(48 << 20, max(16 << 20, 2 * footprint + (4 << 20))))

    cost = pl.CostEstimate(
        flops=2 * N * Cout * K * M,
        transcendentals=N * Cout * M,
        bytes_accessed=(N * K * Mp * act_bytes + Cout * K * act_bytes
                        + 2 * Cout * 4 + N * Cout * Mp * out_bytes),
    )

    out = pl.pallas_call(
        _focus_kernel,
        out_shape=jax.ShapeDtypeStruct((N, Cout, Mp), out_dtype),
        grid_spec=pltpu.PrefetchScalarGridSpec(
            num_scalar_prefetch=0,
            grid=grid,
            in_specs=[
                pl.BlockSpec((1, K, tm), lambda n, i: (n, 0, i)),   # activations (lane-dense)
                pl.BlockSpec((Cout, K), lambda n, i: (0, 0)),       # conv weight (VMEM-resident)
                pl.BlockSpec((Cout, 1), lambda n, i: (0, 0)),       # BN scale (f32)
                pl.BlockSpec((Cout, 1), lambda n, i: (0, 0)),       # BN bias  (f32)
            ],
            out_specs=pl.BlockSpec((1, Cout, tm), lambda n, i: (n, 0, i)),
        ),
        compiler_params=pltpu.CompilerParams(
            dimension_semantics=("parallel", "parallel"),
            vmem_limit_bytes=vmem_limit,
        ),
        cost_estimate=cost,
    )(xm, w_mat, scale, bias)

    if Mp != M:
        out = out[:, :, :M]
    # zero-cost reshape back to NCHW
    return out.reshape(N, Cout, Ho, Wo)


if __name__ == "__main__":
    key = jax.random.PRNGKey(0)
    k_x, k_w, k_g, k_b, k_m, k_v = jax.random.split(key, 6)

    # Module config: in_channels=4, out_channels=8, kernel_size=1, stride=1
    N, Cin, H, W = 2, 4, 16, 16
    Cout = 8

    x = jax.random.normal(k_x, (N, Cin, H, W), dtype=jnp.float32)

    # Deterministic synthetic parameters (conv has no bias; BN follows it).
    conv_w = jax.random.normal(k_w, (Cout, 4 * Cin, 1, 1), dtype=jnp.float32) * 0.1
    bn_gamma = 1.0 + 0.1 * jax.random.normal(k_g, (Cout,), dtype=jnp.float32)
    bn_beta = 0.1 * jax.random.normal(k_b, (Cout,), dtype=jnp.float32)
    bn_mean = 0.1 * jax.random.normal(k_m, (Cout,), dtype=jnp.float32)
    bn_var = jnp.abs(1.0 + 0.1 * jax.random.normal(k_v, (Cout,), dtype=jnp.float32))

    out = jax.jit(focus_forward)(x, conv_w, bn_gamma, bn_beta, bn_mean, bn_var)
    jax.block_until_ready(out)

    # --- pure-JAX f32 reference (exactly the PyTorch semantics) -------------
    tl = x[..., ::2, ::2]; tr = x[..., ::2, 1::2]
    bl = x[..., 1::2, ::2]; br = x[..., 1::2, 1::2]
    xc = jnp.concatenate((tl, bl, tr, br), axis=1)
    ref = jnp.einsum("nchw,oc->nohw", xc, conv_w[:, :, 0, 0])
    inv_std = bn_gamma / jnp.sqrt(bn_var + 0.001)
    ref = ref * inv_std[None, :, None, None] + (bn_beta - bn_mean * inv_std)[None, :, None, None]
    ref = ref * jax.nn.sigmoid(ref)

    assert out.shape == (N, Cout, H // 2, W // 2)
    # bf16 storage / matmul / output -> loosened tolerance vs the f32 reference
    err = float(jnp.max(jnp.abs(out.astype(jnp.float32) - ref)))
    assert jnp.allclose(out.astype(jnp.float32), ref, atol=3e-2, rtol=3e-2), err
    print("KERNEL_OK")
</pallas_src>

<mosaic_0001>
module attributes {stable_mosaic.version = 11 : i64} {
  func.func @_focus_kernel(%arg0: i32, %arg1: i32, %arg2: memref<1x16x128xbf16, #tpu.memory_space<vmem>>, %arg3: memref<8x16xbf16, #tpu.memory_space<vmem>>, %arg4: memref<8x1xf32, #tpu.memory_space<vmem>>, %arg5: memref<8x1xf32, #tpu.memory_space<vmem>>, %arg6: memref<1x8x128xbf16, #tpu.memory_space<vmem>>) attributes {dimension_semantics = [#tpu.dimension_semantics<parallel>, #tpu.dimension_semantics<parallel>], iteration_bounds = array<i64: 2, 1>, scalar_prefetch = 0 : i64, scratch_operands = 0 : i64, tpu.core_type = #tpu.core_type<tc>, window_params = [{transform_indices = @transform_0, window_bounds = array<i64: 1, 16, 128>}, {pipeline_mode = #tpu.pipeline_mode<synchronous>, transform_indices = @transform_1, window_bounds = array<i64: 8, 16>}, {pipeline_mode = #tpu.pipeline_mode<synchronous>, transform_indices = @transform_2, window_bounds = array<i64: 8, 1>}, {pipeline_mode = #tpu.pipeline_mode<synchronous>, transform_indices = @transform_3, window_bounds = array<i64: 8, 1>}, {transform_indices = @transform_4, window_bounds = array<i64: 1, 8, 128>}]} {
    %c0 = arith.constant 0 : index
    %c0_0 = arith.constant 0 : index
    %0 = vector.load %arg3[%c0, %c0_0] : memref<8x16xbf16, #tpu.memory_space<vmem>>, vector<8x16xbf16>
    %c0_1 = arith.constant 0 : index
    %c0_2 = arith.constant 0 : index
    %c0_3 = arith.constant 0 : index
    %1 = vector.load %arg2[%c0_1, %c0_2, %c0_3] : memref<1x16x128xbf16, #tpu.memory_space<vmem>>, vector<1x16x128xbf16>
    %2 = vector.shape_cast %1 : vector<1x16x128xbf16> to vector<16x128xbf16>
    %cst = arith.constant dense<0.000000e+00> : vector<8x128xf32>
    %3 = tpu.matmul %0, %2, %cst {dimension_numbers = #tpu.dot_dimension_numbers<[1], [0], [0], [1], [0, 0, 1, 1], [], []>} : vector<8x16xbf16>, vector<16x128xbf16>, vector<8x128xf32> -> vector<8x128xf32>
    %c0_4 = arith.constant 0 : index
    %c0_5 = arith.constant 0 : index
    %4 = vector.load %arg4[%c0_4, %c0_5] : memref<8x1xf32, #tpu.memory_space<vmem>>, vector<8x1xf32>
    %5 = vector.broadcast %4 : vector<8x1xf32> to vector<8x128xf32>
    %6 = arith.mulf %3, %5 : vector<8x128xf32>
    %c0_6 = arith.constant 0 : index
    %c0_7 = arith.constant 0 : index
    %7 = vector.load %arg5[%c0_6, %c0_7] : memref<8x1xf32, #tpu.memory_space<vmem>>, vector<8x1xf32>
    %8 = vector.broadcast %7 : vector<8x1xf32> to vector<8x128xf32>
    %9 = arith.addf %6, %8 : vector<8x128xf32>
    %cst_8 = arith.constant 0.000000e+00 : f32
    %10 = vector.broadcast %cst_8 : f32 to vector<8x128xf32>
    %11 = arith.subf %10, %9 : vector<8x128xf32>
    %12 = math.exp %11 : vector<8x128xf32>
    %cst_9 = arith.constant 1.000000e+00 : f32
    %13 = vector.broadcast %cst_9 : f32 to vector<8x128xf32>
    %14 = arith.addf %13, %12 : vector<8x128xf32>
    %15 = tpu.reciprocal %14 {approx = true} : vector<8x128xf32> -> vector<8x128xf32>
    %16 = arith.mulf %9, %15 : vector<8x128xf32>
    %17 = arith.truncf %16 : vector<8x128xf32> to vector<8x128xbf16>
    %c0_10 = arith.constant 0 : index
    %c0_11 = arith.constant 0 : index
    %c0_12 = arith.constant 0 : index
    %18 = vector.load %arg6[%c0_10, %c0_11, %c0_12] : memref<1x8x128xbf16, #tpu.memory_space<vmem>>, vector<1x8x128xbf16>
    %19 = vector.shape_cast %18 : vector<1x8x128xbf16> to vector<8x128xbf16>
    %20 = vector.shape_cast %17 : vector<8x128xbf16> to vector<1x8x128xbf16>
    tpu.vector_store %arg6[%c0_10, %c0_11, %c0_12], %20 {strides = array<i32>} : memref<1x8x128xbf16, #tpu.memory_space<vmem>>, vector<1x8x128xbf16>,
    return
  }
  func.func @transform_0(%arg0: i32, %arg1: i32) -> (i32, i32, i32) {
    %c0_i32 = arith.constant 0 : i32
    %c0_i32_0 = arith.constant 0 : i32
    return %arg0, %c0_i32, %arg1 : i32, i32, i32
  }
  func.func @transform_1(%arg0: i32, %arg1: i32) -> (i32, i32) {
    %c0_i32 = arith.constant 0 : i32
    %c0_i32_0 = arith.constant 0 : i32
    %c0_i32_1 = arith.constant 0 : i32
    return %c0_i32, %c0_i32_0 : i32, i32
  }
  func.func @transform_2(%arg0: i32, %arg1: i32) -> (i32, i32) {
    %c0_i32 = arith.constant 0 : i32
    %c0_i32_0 = arith.constant 0 : i32
    %c0_i32_1 = arith.constant 0 : i32
    return %c0_i32, %c0_i32_0 : i32, i32
  }
  func.func @transform_3(%arg0: i32, %arg1: i32) -> (i32, i32) {
    %c0_i32 = arith.constant 0 : i32
    %c0_i32_0 = arith.constant 0 : i32
    %c0_i32_1 = arith.constant 0 : i32
    return %c0_i32, %c0_i32_0 : i32, i32
  }
  func.func @transform_4(%arg0: i32, %arg1: i32) -> (i32, i32, i32) {
    %c0_i32 = arith.constant 0 : i32
    %c0_i32_0 = arith.constant 0 : i32
    return %arg0, %c0_i32, %arg1 : i32, i32, i32
  }
}

</mosaic_0001>

<bundles_post_ra>
// kernel: focus_forward.1
= control target key start
LH: loop header
LB: loop body
LE: loop exit
PB: predicated region body
PF: predicated region fallthrough
CT: control target
= control target key end

     0   :  { %s486_s15 = smov 0   ;;  %s488_s16 = smov 0   ;;  %s532_s0 = inlined_call_operand.vmem [shape: bf16[2,16,128], index: 0, kind: input, shape index: {}]   ;;  %s533_s1 = inlined_call_operand.vmem [shape: bf16[8,16], index: 1, kind: input, shape index: {}]   ;;  %s534_s2 = inlined_call_operand.vmem [shape: f32[8,1], index: 2, kind: input, shape index: {}]   ;;  %s535_s3 = inlined_call_operand.vmem [shape: f32[8,1], index: 3, kind: input, shape index: {}]   ;;  %s536_s4 = inlined_call_operand.vmem [shape: bf16[2,8,128], index: 4, kind: output, shape index: {}]  }
   0x1   :  { %s490_s17 = smov 0  }
   0x2 LB: > { %s26_s18 = sadd.s32 1, %s452_s16  ;;  %p384_p0 = scmp.ge.s32.totalorder %s456_s17, 1  ;;  %s456_s17 = sphi %s490_s17, %s14_s17   ;;  %s452_s16 = sphi %s488_s16, %s538_s16   ;;  %s448_s15 = sphi %s486_s15, %s537_s15  }
   0x3   : > { %p28_p1 = scmp.ge.s32.totalorder %s26_s18, 2  ;;  %p181_p2 = scmp.lt.s32.totalorder %s456_s17, 3 }
   0x5   : > { %s540_s18 = smov (%p28_p1, %s26_s18), 0  ;;  %p182_p3 = pnand %p384_p0, %p181_p2 }
   0x6   : > { %p212_p4 = scmp.lt.s32.totalorder (!%p182_p3), %s448_s15, 1  ;;  %v458_v0 = vmov (!%p182_p3), 0.0   ;;  %vm459_vm0 = vmmov (!%p182_p3), 0   ;;  %v281_v1 = vld [vmem:[%s534_s2] sm:$0xff] (!%p182_p3)  ;;  %v460_v2 = vmov (!%p182_p3), 0   ;;  %vm237_vm1 = vcmask (!%p182_p3), 130048  }
   0x7   : > { %185 = sbr.rel (%p182_p3) target bundleno = 270 (0x10e), region = 36  ;;  %395 = vmatprep.subr.bf16.mxu0 (!%p182_p3), %v458_v0  ;;  %397 = vmatprep.mubr.msk.bf16.mxu0 (!%p182_p3), %vm459_vm0, %v458_v0  ;;  %v288_v3 = vld [vmem:[%s535_s3] sm:$0xff] (!%p182_p3) }
   0x8   : > { %428 = vset.pattern.permute.xlu0 (!%p182_p3), %v460_v2  ;;  %v228_v5 = vld [vmem:[%s533_s1] sm:$0xf] (!%p182_p3) }
   0x9   : > { %284 = vperm.xlu0 (!%p182_p3), %428, %v281_v1  }
   0xd   : > { %291 = vperm.xlu0 (!%p182_p3), %428, %v288_v3  }
   0xe   : > { %s542_s15 = smov (!%p212_p4, %s448_s15), 1 }
   0xf   : > { %s392_s21 = sshll.u32 %s542_s15, 3  ;;  %s387_s29 = sshll.u32 %s542_s15, 2 }
  0x10   : > { %s219_s26 = scalar_lea.vmem %s532_s0, %s392_s21  ;;  %s226_s6 = scalar_lea.vmem %s536_s4, %s387_s29 }
  0x11   : > { %v429_v4 = vld [vmem:[%s219_s26] sm:$0xff]  }
  0x12   : > { %396 = vmatpush3.bf16.msra.mxu0 %v429_v4 }
  0x15   : > { %398 = vmatmul.mubr.msk.bf16.vlgmr.msra.gmra.mrb[0].mxu0 %vm237_vm1, %v228_v5 }
  0x88   : > { %v285_v6 = vpop.permute.xlu0 %284 }
  0x8c   : > { %v292_v10 = vpop.permute.xlu0 %291 }
  0xe8   : > { %v275_v7 = vpop.f32.mrb[0].mxu0 }
  0xe9   : > { %v287_v8 = vmul.f32 %v285_v6, %v275_v7  ;;  %v399_v9 = vpop.f32.mrb[1].mxu0 }
  0xea   : > { %v278_v11 = vpop.f32.mrb[2].mxu0 }
  0xeb   : > { %v294_v12 = vadd.f32 %v292_v10, %v287_v8  ;;  %v400_v13 = vpop.f32.mrb[3].mxu0 }
  0xed   : > { %v295_v14 = vsub.f32 0.0, %v294_v12 }
  0xef   : > { %v296_v15 = vmul.f32 1.442695, %v295_v14 }
  0xf1   : > { %430 = vpow2.f32 %v296_v15 }
  0xfb   : > { %v431_v16 = vpop.eup %430 }
  0xfc   : > { %v298_v17 = vadd.f32 1.0, %v431_v16 }
  0xfe   : > { %432 = vrcp.f32 %v298_v17 }
 0x108   : > { %v433_v18 = vpop.eup %432 }
 0x109   : > { %v300_v19 = vmul.f32 %v433_v18, %v294_v12 }
 0x10b   : > { %v301_v20 = vpack.c.bf16 %v300_v19, %v300_v19 }
 0x10d   : > { %302 = vst [vmem:[%s226_s6] sm:$0xf] %v301_v20 }
 0x10e PF: > { %s14_s17 = sadd.s32 1, %s456_s17   ;;  %s537_s15 = smov %s452_s16 }
 0x10f   : > { %p11_p5 = scmp.ge.s32.totalorder %s14_s17, 4   ;;  %s538_s16 = smov %s540_s18 }
 0x111   :  { %13 = sbr.rel (!%p11_p5) target bundleno = 2 (0x2), region = 66 }

</bundles_post_ra>
